<compile_context>
chip_gen: v6e
topology: v6e:2x2x1
jax: 0.10.0
libtpu: 0.0.40
codegen_flags: <defaults>
</compile_context>

<pallas_src>
import math

import jax
import jax.numpy as jnp
from jax import lax
from jax.experimental import pallas as pl
from jax.experimental.pallas import tpu as pltpu


# ---------------- helpers ----------------

def _cdiv(a, b):
    return (a + b - 1) // b


def _round_up(a, b):
    return _cdiv(a, b) * b


# ---------------- Pallas kernels ----------------

_LANE = 512                      # lane-dense last dim (multiple of 128)
_BLOCK_ROWS_MAX = 1024           # 1024 x 512 x 4B = 2 MiB per f32 buffer
_VMEM_LIMIT = 48 * 1024 * 1024   # safe on v5e/v6e (128 MiB) and v7x (64 MiB)
_SMALL_FALLBACK = 16384          # below this, launch/pad overhead dominates


def _make_elem_kernel(weighted, scale, out_dtype):
    """Elementwise |o - t| (* w) * loss_weight (reduction='none')."""
    if weighted:
        def kern(o_ref, t_ref, w_ref, out_ref):
            d = jnp.abs((o_ref[...].astype(jnp.float32)
                         - t_ref[...].astype(jnp.float32))
                        * w_ref[...].astype(jnp.float32))
            out_ref[...] = (d * scale).astype(out_dtype)
    else:
        def kern(o_ref, t_ref, out_ref):
            d = jnp.abs(o_ref[...].astype(jnp.float32)
                        - t_ref[...].astype(jnp.float32))
            out_ref[...] = (d * scale).astype(out_dtype)
    return kern


def _make_partial_sum_kernel(weighted, block_rows, rows_total, needs_mask):
    """Per-block vector partial sum of |o - t| (* w).

    Each grid step writes an (8, _LANE) f32 partial (sublane-group VALU adds
    only -- the single cross-lane reduce happens in the wrapper).  The final
    ragged block (if any) is masked with a row-index iota so the unspecified
    out-of-bounds rows contribute zero.
    """
    n_sub = block_rows // 8

    def reduce_tile(d, i):
        if needs_mask:
            limit = rows_total - i * block_rows
            row = lax.broadcasted_iota(jnp.int32, (block_rows, _LANE), 0)
            d = jnp.where(row < limit, d, 0.0)
        return jnp.sum(d.reshape(n_sub, 8, _LANE), axis=0)

    if weighted:
        def kern(o_ref, t_ref, w_ref, out_ref):
            i = pl.program_id(0)
            d = jnp.abs((o_ref[...].astype(jnp.float32)
                         - t_ref[...].astype(jnp.float32))
                        * w_ref[...].astype(jnp.float32))
            out_ref[...] = reduce_tile(d, i)
    else:
        def kern(o_ref, t_ref, out_ref):
            i = pl.program_id(0)
            d = jnp.abs(o_ref[...].astype(jnp.float32)
                        - t_ref[...].astype(jnp.float32))
            out_ref[...] = reduce_tile(d, i)
    return kern


# ---------------- wrapper ----------------

def l1_loss(output, target, target_weight=None, *, reduction="mean",
            use_target_weight=False, loss_weight=1.0):
    assert reduction in ("mean", "sum", "none")
    assert output.shape == target.shape
    orig_shape = output.shape
    total = int(math.prod(orig_shape))

    w_full = None
    if use_target_weight:
        assert target_weight is not None
        w = target_weight
        while w.ndim < target.ndim:
            w = w[..., None]
        # TODO(synk): stream the unbroadcast (N, K) weight and expand it
        # in-kernel with a lane interleave to cut the extra weight HBM traffic;
        # kept the wrapper-side broadcast for lowering safety at D=2.
        w_full = jnp.broadcast_to(w, target.shape)

    out_dtype = jnp.result_type(
        output.dtype, target.dtype,
        *((w_full.dtype,) if w_full is not None else ()))
    if not jnp.issubdtype(out_dtype, jnp.floating):
        out_dtype = jnp.float32

    # ---- tiny-input fast path: launch + padding overhead dominates ----
    if total < _SMALL_FALLBACK:
        diff = output.astype(jnp.float32) - target.astype(jnp.float32)
        if w_full is not None:
            diff = diff * w_full.astype(jnp.float32)
        d = jnp.abs(diff)
        if reduction == "none":
            return (d * loss_weight).astype(out_dtype)
        s = jnp.sum(d)
        if reduction == "mean":
            s = s / total
        return s * jnp.float32(loss_weight)

    # ---- lane-dense 2-D layout (rows2, _LANE), rows2 aligned to 16 ----
    rows = _cdiv(total, _LANE)
    rows2 = _round_up(rows, 16)            # sublane alignment (f32/bf16 safe)
    padded_total = rows2 * _LANE

    def to2d(x):
        x = x.reshape(-1)
        if padded_total != total:
            # Only the partial tail row(s) are padded; zeros contribute
            # nothing to the sum paths (|0-0|*0 == 0).
            x = jnp.pad(x, (0, padded_total - total))
        return x.reshape(rows2, _LANE)

    inputs = [to2d(output), to2d(target)]
    if use_target_weight:
        inputs.append(to2d(w_full))

    block_rows = min(_BLOCK_ROWS_MAX, rows2)   # multiple of 16 either way
    grid = (_cdiv(rows2, block_rows),)
    in_blk = pl.BlockSpec((block_rows, _LANE), lambda i: (i, 0))
    in_specs = [in_blk] * len(inputs)

    if reduction == "none":
        kern = _make_elem_kernel(use_target_weight, float(loss_weight),
                                 out_dtype)
        out = pl.pallas_call(
            kern,
            out_shape=jax.ShapeDtypeStruct((rows2, _LANE), out_dtype),
            grid=grid,
            in_specs=in_specs,
            out_specs=in_blk,
            compiler_params=pltpu.CompilerParams(
                dimension_semantics=("parallel",),
                vmem_limit_bytes=_VMEM_LIMIT),
        )(*inputs)
        flat = out.reshape(-1)
        if padded_total != total:
            flat = flat[:total]
        return flat.reshape(orig_shape)

    # 'mean' / 'sum': parallel per-block partial sums, finished in the wrapper.
    needs_mask = (rows2 % block_rows) != 0
    kern = _make_partial_sum_kernel(use_target_weight, block_rows, rows2,
                                    needs_mask)
    partials = pl.pallas_call(
        kern,
        out_shape=jax.ShapeDtypeStruct((grid[0], 8, _LANE), jnp.float32),
        grid=grid,
        in_specs=in_specs,
        out_specs=pl.BlockSpec((None, 8, _LANE), lambda i: (i, 0, 0)),
        compiler_params=pltpu.CompilerParams(
            dimension_semantics=("parallel",),
            vmem_limit_bytes=_VMEM_LIMIT),
    )(*inputs)
    s = jnp.sum(partials)
    if reduction == "mean":
        s = s / total
    return s * jnp.float32(loss_weight)


# ---------------- demo / self-test ----------------

if __name__ == "__main__":
    key = jax.random.PRNGKey(0)
    keys = jax.random.split(key, 8)
    D = 2

    # pure-JAX reference (matches the PyTorch module)
    def ref_l1(o, t, w=None, reduction="mean", lw=1.0):
        if w is not None:
            wb = jnp.broadcast_to(w[..., None], t.shape)
            o = o * wb
            t = t * wb
        d = jnp.abs(o - t)
        if reduction == "mean":
            r = jnp.mean(d)
        elif reduction == "sum":
            r = jnp.sum(d)
        else:
            r = d
        return r * lw

    # ---- tiny pose shapes (N, K, 2): jnp fast path ----
    N, K = 2, 16
    out_s = jax.random.normal(keys[0], (N, K, D), jnp.float32)
    tgt_s = jax.random.normal(keys[1], (N, K, D), jnp.float32)
    w_s = jax.random.uniform(keys[2], (N, K), jnp.float32)

    l_mean_s = l1_loss(out_s, tgt_s, reduction="mean")
    l_wsum_s = l1_loss(out_s, tgt_s, w_s, reduction="sum",
                       use_target_weight=True, loss_weight=0.5)
    l_none_s = l1_loss(out_s, tgt_s, w_s, reduction="none",
                       use_target_weight=True)

    # ---- medium, lane-misaligned (exercises tail pad + 'none' slice) ----
    Nm, Km = 70, 333
    out_m = jax.random.normal(keys[3], (Nm, Km, D), jnp.float32)
    tgt_m = jax.random.normal(keys[4], (Nm, Km, D), jnp.float32)
    w_m = jax.random.uniform(keys[5], (Nm, Km), jnp.float32)
    l_none_m = l1_loss(out_m, tgt_m, w_m, reduction="none",
                       use_target_weight=True, loss_weight=2.0)
    l_mean_m = l1_loss(out_m, tgt_m, reduction="mean")

    # ---- large (multi-block grid, ragged final block, parallel partials) ----
    Nl, Kl = 290, 1024
    out_l = jax.random.normal(keys[6], (Nl, Kl, D), jnp.float32)
    tgt_l = jax.random.normal(keys[7], (Nl, Kl, D), jnp.float32)
    w_l = jax.random.uniform(keys[2], (Nl, Kl), jnp.float32)
    l_mean_l = l1_loss(out_l, tgt_l, reduction="mean")
    l_wsum_l = l1_loss(out_l, tgt_l, w_l, reduction="sum",
                       use_target_weight=True, loss_weight=0.5)

    jax.block_until_ready((l_mean_s, l_wsum_s, l_none_s,
                           l_none_m, l_mean_m, l_mean_l, l_wsum_l))

    # ---- numerical checks ----
    assert jnp.allclose(l_mean_s, ref_l1(out_s, tgt_s), atol=1e-6)
    assert jnp.allclose(l_wsum_s, ref_l1(out_s, tgt_s, w_s, "sum", 0.5),
                        atol=1e-5)
    assert jnp.allclose(l_none_s, ref_l1(out_s, tgt_s, w_s, "none"),
                        atol=1e-6)
    assert jnp.allclose(l_none_m, ref_l1(out_m, tgt_m, w_m, "none", 2.0),
                        atol=1e-5)
    assert jnp.allclose(l_mean_m, ref_l1(out_m, tgt_m),
                        rtol=1e-5, atol=1e-5)
    assert jnp.allclose(l_mean_l, ref_l1(out_l, tgt_l),
                        rtol=1e-4, atol=1e-4)
    assert jnp.allclose(l_wsum_l, ref_l1(out_l, tgt_l, w_l, "sum", 0.5),
                        rtol=2e-4, atol=1.0)

    print("KERNEL_OK")
</pallas_src>

<mosaic_0001>
module attributes {stable_mosaic.version = 11 : i64} {
  func.func @kern(%arg0: i32, %arg1: memref<96x512xf32, #tpu.memory_space<vmem>>, %arg2: memref<96x512xf32, #tpu.memory_space<vmem>>, %arg3: memref<96x512xf32, #tpu.memory_space<vmem>>, %arg4: memref<96x512xf32, #tpu.memory_space<vmem>>) attributes {dimension_semantics = [#tpu.dimension_semantics<parallel>], iteration_bounds = array<i64: 1>, scalar_prefetch = 0 : i64, scratch_operands = 0 : i64, tpu.core_type = #tpu.core_type<tc>, window_params = [{transform_indices = @transform_0, window_bounds = array<i64: 96, 512>}, {transform_indices = @transform_1, window_bounds = array<i64: 96, 512>}, {transform_indices = @transform_2, window_bounds = array<i64: 96, 512>}, {transform_indices = @transform_3, window_bounds = array<i64: 96, 512>}]} {
    %c0 = arith.constant 0 : index
    %c0_0 = arith.constant 0 : index
    %0 = vector.load %arg1[%c0, %c0_0] : memref<96x512xf32, #tpu.memory_space<vmem>>, vector<96x512xf32>
    %c0_1 = arith.constant 0 : index
    %c0_2 = arith.constant 0 : index
    %1 = vector.load %arg2[%c0_1, %c0_2] : memref<96x512xf32, #tpu.memory_space<vmem>>, vector<96x512xf32>
    %2 = arith.subf %0, %1 : vector<96x512xf32>
    %c0_3 = arith.constant 0 : index
    %c0_4 = arith.constant 0 : index
    %3 = vector.load %arg3[%c0_3, %c0_4] : memref<96x512xf32, #tpu.memory_space<vmem>>, vector<96x512xf32>
    %4 = arith.mulf %2, %3 : vector<96x512xf32>
    %5 = math.absf %4 : vector<96x512xf32>
    %cst = arith.constant 2.000000e+00 : f32
    %6 = vector.broadcast %cst : f32 to vector<96x512xf32>
    %7 = arith.mulf %5, %6 : vector<96x512xf32>
    %c0_5 = arith.constant 0 : index
    %c0_6 = arith.constant 0 : index
    %8 = vector.load %arg4[%c0_5, %c0_6] : memref<96x512xf32, #tpu.memory_space<vmem>>, vector<96x512xf32>
    tpu.vector_store %arg4[%c0_5, %c0_6], %7 {strides = array<i32>} : memref<96x512xf32, #tpu.memory_space<vmem>>, vector<96x512xf32>,
    return
  }
  func.func @transform_0(%arg0: i32) -> (i32, i32) {
    %c0_i32 = arith.constant 0 : i32
    %c0_i32_0 = arith.constant 0 : i32
    return %arg0, %c0_i32 : i32, i32
  }
  func.func @transform_1(%arg0: i32) -> (i32, i32) {
    %c0_i32 = arith.constant 0 : i32
    %c0_i32_0 = arith.constant 0 : i32
    return %arg0, %c0_i32 : i32, i32
  }
  func.func @transform_2(%arg0: i32) -> (i32, i32) {
    %c0_i32 = arith.constant 0 : i32
    %c0_i32_0 = arith.constant 0 : i32
    return %arg0, %c0_i32 : i32, i32
  }
  func.func @transform_3(%arg0: i32) -> (i32, i32) {
    %c0_i32 = arith.constant 0 : i32
    %c0_i32_0 = arith.constant 0 : i32
    return %arg0, %c0_i32 : i32, i32
  }
}

</mosaic_0001>

<bundles_post_ra>
// kernel: tpu_custom_call.1
= control target key start
LH: loop header
LB: loop body
LE: loop exit
PB: predicated region body
PF: predicated region fallthrough
CT: control target
= control target key end

     0   :  { %8 = vsyncpa [#allocation3], 0  ;;  %s600_s0 = inlined_call_operand.hbm [shape: f32[96,512], index: 0, kind: input, shape index: {}]   ;;  %s601_s1 = inlined_call_operand.hbm [shape: f32[96,512], index: 1, kind: input, shape index: {}]   ;;  %s602_s2 = inlined_call_operand.hbm [shape: f32[96,512], index: 2, kind: input, shape index: {}]   ;;  %s603_s3 = inlined_call_operand.hbm [shape: f32[96,512], index: 3, kind: output, shape index: {}]  }
   0x1   :  { %9 = vsyncpa [#allocation6], 0 }
   0x2   :  { %10 = vsyncpa [#allocation4], 0  ;;  %s550_s12 = smov [#allocation5]   ;;  %s551_s14 = smov [#allocation2]  }
   0x3   :  { %s28_s13 = sshll.u32 %s550_s12, 4  ;;  %s16_s15 = sshll.u32 %s551_s14, 4  ;;  %s29_s13 = int_to_ptr.vmem [resolvable:$true] %s28_s13  ;;  %s17_s15 = int_to_ptr.vmem [resolvable:$true] %s16_s15 }
   0x4   :  { %s472_s16 = scalar_lea.vmem %s29_s13, 6144  ;;  %p477_p1 = scmp.lt.s32.totalorder %s29_s13, %s29_s13 }
   0x5   :  { %p473_p0 = scmp.ne.s32.totalorder %s29_s13, %s472_s16  ;;  %p478_p2 = scmp.lt.s32.totalorder %s472_s16, %s472_s16 }
   0x7   :  { %p479_p3 = por %p478_p2, %p477_p1 }
   0x9   :  { %p480_p4 = pnand %p479_p3, %p473_p0 }
   0xb   :  { %483 = shalt.err (!%p480_p4)
}
   0xc   :  { %s552_s17 = smov 512   ;;  %s553_s18 = smov 32  }
   0xd   :  { %34 = dma.hbm_to_vmem [thread:$0]  %s601_s1, 6144, %s29_s13, [#allocation6], %s552_s17, %s552_s17, %s553_s18  }
   0xe   :  { %s492_s21 = scalar_lea.vmem %s17_s15, 6144  ;;  %p497_p6 = scmp.lt.s32.totalorder %s17_s15, %s17_s15 }
   0xf   :  { %p493_p5 = scmp.ne.s32.totalorder %s17_s15, %s492_s21  ;;  %p498_p7 = scmp.lt.s32.totalorder %s492_s21, %s492_s21 }
  0x11   :  { %p499_p8 = por %p498_p7, %p497_p6 }
  0x13   :  { %p500_p9 = pnand %p499_p8, %p493_p5 }
  0x15   :  { %503 = shalt.err (!%p500_p9)
}
  0x16   :  { %22 = dma.hbm_to_vmem [thread:$0]  %s600_s0, 6144, %s17_s15, [#allocation3], %s552_s17, %s552_s17, %s553_s18  }
  0x17   :  { %s554_s24 = smov [#allocation7]  }
  0x18   :  { %s40_s25 = sshll.u32 %s554_s24, 4  ;;  %s41_s25 = int_to_ptr.vmem [resolvable:$true] %s40_s25 }
  0x19   :  { %s512_s26 = scalar_lea.vmem %s41_s25, 6144  ;;  %p517_p11 = scmp.lt.s32.totalorder %s41_s25, %s41_s25 }
  0x1a   :  { %p513_p10 = scmp.ne.s32.totalorder %s41_s25, %s512_s26  ;;  %p518_p12 = scmp.lt.s32.totalorder %s512_s26, %s512_s26 }
  0x1c   :  { %p519_p13 = por %p518_p12, %p517_p11 }
  0x1e   :  { %p520_p0 = pnand %p519_p13, %p513_p10 }
  0x20   :  { %523 = shalt.err (!%p520_p0)
}
  0x21   :  { %46 = dma.hbm_to_vmem [thread:$0]  %s602_s2, 6144, %s41_s25, [#allocation6], %s552_s17, %s552_s17, %s553_s18  }
  0x22   :  { %544 = dma.done.wait [#allocation3], 6144  }
  0x23   :  { %545 = vsyncadd [#allocation3], 4294961152 }
  0x24   :  { %546 = dma.done.wait [#allocation6], 12288  }
  0x25   :  { %547 = vsyncadd [#allocation6], 4294955008  ;;  %v56_v0 = vld [vmem:[#allocation2] sm:$0xff]  ;;  %v57_v4 = vld [vmem:[#allocation2 + $0x8] sm:$0xff]  ;;  %s555_s0 = smov [#allocation8]  }
  0x26   :  { %v104_v1 = vld [vmem:[#allocation5] sm:$0xff]  ;;  %v105_v5 = vld [vmem:[#allocation5 + $0x8] sm:$0xff]  ;;  %v58_v8 = vld [vmem:[#allocation2 + $0x10] sm:$0xff]  ;;  %s445_s2 = sshll.u32 %s555_s0, 4  ;;  %s446_s2 = int_to_ptr.vmem [resolvable:$true] %s445_s2 }
  0x27   :  { %v200_v2 = vld [vmem:[#allocation7] sm:$0xff]  ;;  %v152_v3 = vsub.f32 %v56_v0, %v104_v1  ;;  %v201_v6 = vld [vmem:[#allocation7 + $0x8] sm:$0xff]  ;;  %v153_v7 = vsub.f32 %v57_v4, %v105_v5  ;;  %v106_v9 = vld [vmem:[#allocation5 + $0x10] sm:$0xff]  ;;  %s524_s28 = scalar_lea.vmem %s446_s2, 6144  ;;  %p529_p2 = scmp.lt.s32.totalorder %s446_s2, %s446_s2 }
  0x28   :  { %v202_v10 = vld [vmem:[#allocation7 + $0x10] sm:$0xff]  ;;  %v154_v12 = vsub.f32 %v58_v8, %v106_v9  ;;  %v59_v13 = vld [vmem:[#allocation2 + $0x18] sm:$0xff]  ;;  %v60_v18 = vld [vmem:[#allocation2 + $0x20] sm:$0xff]  ;;  %p525_p1 = scmp.ne.s32.totalorder %s446_s2, %s524_s28  ;;  %p530_p3 = scmp.lt.s32.totalorder %s524_s28, %s524_s28 }
  0x29   :  { %v248_v11 = vmul.f32 %v200_v2, %v152_v3  ;;  %v107_v14 = vld [vmem:[#allocation5 + $0x18] sm:$0xff]  ;;  %v249_v16 = vmul.f32 %v201_v6, %v153_v7  ;;  %v108_v19 = vld [vmem:[#allocation5 + $0x20] sm:$0xff]  ;;  %v61_v24 = vld [vmem:[#allocation2 + $0x28] sm:$0xff] }
  0x2a   :  { %v203_v15 = vld [vmem:[#allocation7 + $0x18] sm:$0xff]  ;;  %v155_v17 = vsub.f32 %v59_v13, %v107_v14  ;;  %v204_v20 = vld [vmem:[#allocation7 + $0x20] sm:$0xff]  ;;  %v250_v22 = vmul.f32 %v202_v10, %v154_v12  ;;  %v156_v23 = vsub.f32 %v60_v18, %v108_v19  ;;  %v109_v25 = vld [vmem:[#allocation5 + $0x28] sm:$0xff]  ;;  %p531_p4 = por %p530_p3, %p529_p2 }
  0x2b   :  { %v296_v21 = vand.u32 2147483647, %v248_v11  ;;  %v205_v26 = vld [vmem:[#allocation7 + $0x28] sm:$0xff]  ;;  %v297_v27 = vand.u32 2147483647, %v249_v16  ;;  %v157_v29 = vsub.f32 %v61_v24, %v109_v25  ;;  %v62_v30 = vld [vmem:[#allocation2 + $0x30] sm:$0xff] }
  0x2c   :  { %v251_v28 = vmul.f32 %v203_v15, %v155_v17  ;;  %v110_v31 = vld [vmem:[#allocation5 + $0x30] sm:$0xff]  ;;  %v298_v34 = vand.u32 2147483647, %v250_v22  ;;  %v252_v35 = vmul.f32 %v204_v20, %v156_v23  ;;  %v63_v37 = vld [vmem:[#allocation2 + $0x38] sm:$0xff]  ;;  %v64_v44 = vld [vmem:[#allocation2 + $0x40] sm:$0xff]  ;;  %p532_p5 = pnand %p531_p4, %p525_p1 }
  0x2d   :  { %v206_v32 = vld [vmem:[#allocation7 + $0x30] sm:$0xff]  ;;  %v344_v33 = vmul.f32 2.0, %v296_v21  ;;  %v158_v36 = vsub.f32 %v62_v30, %v110_v31  ;;  %v111_v38 = vld [vmem:[#allocation5 + $0x38] sm:$0xff]  ;;  %v345_v40 = vmul.f32 2.0, %v297_v27  ;;  %v253_v42 = vmul.f32 %v205_v26, %v157_v29  ;;  %v112_v45 = vld [vmem:[#allocation5 + $0x40] sm:$0xff] }
  0x2e   :  { %v207_v39 = vld [vmem:[#allocation7 + $0x38] sm:$0xff]  ;;  %v299_v41 = vand.u32 2147483647, %v251_v28  ;;  %v159_v43 = vsub.f32 %v63_v37, %v111_v38  ;;  %v208_v46 = vld [vmem:[#allocation7 + $0x40] sm:$0xff]  ;;  %v346_v47 = vmul.f32 2.0, %v298_v34  ;;  %v160_v50 = vsub.f32 %v64_v44, %v112_v45  ;;  %v65_v51 = vld [vmem:[#allocation2 + $0x48] sm:$0xff] }
  0x2f   :  { %392 = vst [vmem:[#allocation8] sm:$0xff] %v344_v33  ;;  %v300_v48 = vand.u32 2147483647, %v252_v35  ;;  %v254_v49 = vmul.f32 %v206_v32, %v158_v36  ;;  %v113_v52 = vld [vmem:[#allocation5 + $0x48] sm:$0xff]  ;;  %393 = vst [vmem:[#allocation8 + $0x8] sm:$0xff] %v345_v40  ;;  %v66_v58 = vld [vmem:[#allocation2 + $0x50] sm:$0xff] }
  0x30   :  { %v209_v53 = vld [vmem:[#allocation7 + $0x48] sm:$0xff]  ;;  %v347_v54 = vmul.f32 2.0, %v299_v41  ;;  %v301_v55 = vand.u32 2147483647, %v253_v42  ;;  %v255_v56 = vmul.f32 %v207_v39, %v159_v43  ;;  %v161_v57 = vsub.f32 %v65_v51, %v113_v52  ;;  %v114_v59 = vld [vmem:[#allocation5 + $0x50] sm:$0xff]  ;;  %394 = vst [vmem:[#allocation8 + $0x10] sm:$0xff] %v346_v47 }
  0x31   :  { %v210_v60 = vld [vmem:[#allocation7 + $0x50] sm:$0xff]  ;;  %v348_v61 = vmul.f32 2.0, %v300_v48  ;;  %v302_v62 = vand.u32 2147483647, %v254_v49  ;;  %v256_v63 = vmul.f32 %v208_v46, %v160_v50  ;;  %v162_v0 = vsub.f32 %v66_v58, %v114_v59  ;;  %v67_v1 = vld [vmem:[#allocation2 + $0x58] sm:$0xff]  ;;  %v68_v8 = vld [vmem:[#allocation2 + $0x60] sm:$0xff] }
  0x32   :  { %v115_v2 = vld [vmem:[#allocation5 + $0x58] sm:$0xff]  ;;  %395 = vst [vmem:[#allocation8 + $0x18] sm:$0xff] %v347_v54  ;;  %v349_v4 = vmul.f32 2.0, %v301_v55  ;;  %v303_v5 = vand.u32 2147483647, %v255_v56  ;;  %v257_v6 = vmul.f32 %v209_v53, %v161_v57  ;;  %v116_v9 = vld [vmem:[#allocation5 + $0x60] sm:$0xff] }
  0x33   :  { %v211_v3 = vld [vmem:[#allocation7 + $0x58] sm:$0xff]  ;;  %v163_v7 = vsub.f32 %v67_v1, %v115_v2  ;;  %v212_v10 = vld [vmem:[#allocation7 + $0x60] sm:$0xff]  ;;  %396 = vst [vmem:[#allocation8 + $0x20] sm:$0xff] %v348_v61  ;;  %v350_v11 = vmul.f32 2.0, %v302_v62  ;;  %v304_v12 = vand.u32 2147483647, %v256_v63  ;;  %v258_v13 = vmul.f32 %v210_v60, %v162_v0 }
  0x34   :  { %v164_v14 = vsub.f32 %v68_v8, %v116_v9  ;;  %v69_v15 = vld [vmem:[#allocation2 + $0x68] sm:$0xff]  ;;  %397 = vst [vmem:[#allocation8 + $0x28] sm:$0xff] %v349_v4  ;;  %v351_v18 = vmul.f32 2.0, %v303_v5  ;;  %v305_v19 = vand.u32 2147483647, %v257_v6  ;;  %v70_v22 = vld [vmem:[#allocation2 + $0x70] sm:$0xff] }
  0x35   :  { %v117_v16 = vld [vmem:[#allocation5 + $0x68] sm:$0xff]  ;;  %v259_v20 = vmul.f32 %v211_v3, %v163_v7  ;;  %v118_v23 = vld [vmem:[#allocation5 + $0x70] sm:$0xff]  ;;  %398 = vst [vmem:[#allocation8 + $0x30] sm:$0xff] %v350_v11  ;;  %v352_v25 = vmul.f32 2.0, %v304_v12  ;;  %v306_v26 = vand.u32 2147483647, %v258_v13 }
  0x36   :  { %v213_v17 = vld [vmem:[#allocation7 + $0x68] sm:$0xff]  ;;  %v165_v21 = vsub.f32 %v69_v15, %v117_v16  ;;  %v214_v24 = vld [vmem:[#allocation7 + $0x70] sm:$0xff]  ;;  %v260_v27 = vmul.f32 %v212_v10, %v164_v14  ;;  %v166_v28 = vsub.f32 %v70_v22, %v118_v23  ;;  %v71_v29 = vld [vmem:[#allocation2 + $0x78] sm:$0xff]  ;;  %399 = vst [vmem:[#allocation8 + $0x38] sm:$0xff] %v351_v18  ;;  %v353_v32 = vmul.f32 2.0, %v305_v19 }
  0x37   :  { %v119_v30 = vld [vmem:[#allocation5 + $0x78] sm:$0xff]  ;;  %v307_v33 = vand.u32 2147483647, %v259_v20  ;;  %v72_v36 = vld [vmem:[#allocation2 + $0x80] sm:$0xff]  ;;  %400 = vst [vmem:[#allocation8 + $0x40] sm:$0xff] %v352_v25  ;;  %v354_v39 = vmul.f32 2.0, %v306_v26 }
  0x38   :  { %v215_v31 = vld [vmem:[#allocation7 + $0x78] sm:$0xff]  ;;  %v261_v34 = vmul.f32 %v213_v17, %v165_v21  ;;  %v167_v35 = vsub.f32 %v71_v29, %v119_v30  ;;  %v120_v37 = vld [vmem:[#allocation5 + $0x80] sm:$0xff]  ;;  %v308_v40 = vand.u32 2147483647, %v260_v27  ;;  %v262_v41 = vmul.f32 %v214_v24, %v166_v28  ;;  %v73_v43 = vld [vmem:[#allocation2 + $0x88] sm:$0xff]  ;;  %401 = vst [vmem:[#allocation8 + $0x48] sm:$0xff] %v353_v32 }
  0x39   :  { %v216_v38 = vld [vmem:[#allocation7 + $0x80] sm:$0xff]  ;;  %v168_v42 = vsub.f32 %v72_v36, %v120_v37  ;;  %v121_v44 = vld [vmem:[#allocation5 + $0x88] sm:$0xff]  ;;  %v355_v46 = vmul.f32 2.0, %v307_v33  ;;  %v74_v50 = vld [vmem:[#allocation2 + $0x90] sm:$0xff]  ;;  %402 = vst [vmem:[#allocation8 + $0x50] sm:$0xff] %v354_v39 }
  0x3a   :  { %v217_v45 = vld [vmem:[#allocation7 + $0x88] sm:$0xff]  ;;  %v309_v47 = vand.u32 2147483647, %v261_v34  ;;  %v263_v48 = vmul.f32 %v215_v31, %v167_v35  ;;  %v169_v49 = vsub.f32 %v73_v43, %v121_v44  ;;  %v122_v51 = vld [vmem:[#allocation5 + $0x90] sm:$0xff]  ;;  %v356_v53 = vmul.f32 2.0, %v308_v40  ;;  %v75_v57 = vld [vmem:[#allocation2 + $0x98] sm:$0xff] }
  0x3b   :  { %v218_v52 = vld [vmem:[#allocation7 + $0x90] sm:$0xff]  ;;  %v310_v54 = vand.u32 2147483647, %v262_v41  ;;  %v264_v55 = vmul.f32 %v216_v38, %v168_v42  ;;  %v170_v56 = vsub.f32 %v74_v50, %v122_v51  ;;  %v123_v58 = vld [vmem:[#allocation5 + $0x98] sm:$0xff]  ;;  %403 = vst [vmem:[#allocation8 + $0x58] sm:$0xff] %v355_v46  ;;  %v76_v0 = vld [vmem:[#allocation2 + $0xa0] sm:$0xff] }
  0x3c   :  { %v219_v59 = vld [vmem:[#allocation7 + $0x98] sm:$0xff]  ;;  %v357_v60 = vmul.f32 2.0, %v309_v47  ;;  %v311_v61 = vand.u32 2147483647, %v263_v48  ;;  %v265_v62 = vmul.f32 %v217_v45, %v169_v49  ;;  %v171_v63 = vsub.f32 %v75_v57, %v123_v58  ;;  %v124_v1 = vld [vmem:[#allocation5 + $0xa0] sm:$0xff]  ;;  %404 = vst [vmem:[#allocation8 + $0x60] sm:$0xff] %v356_v53 }
  0x3d   :  { %v220_v2 = vld [vmem:[#allocation7 + $0xa0] sm:$0xff]  ;;  %v358_v3 = vmul.f32 2.0, %v310_v54  ;;  %v312_v4 = vand.u32 2147483647, %v264_v55  ;;  %v266_v5 = vmul.f32 %v218_v52, %v170_v56  ;;  %v172_v6 = vsub.f32 %v76_v0, %v124_v1  ;;  %v77_v7 = vld [vmem:[#allocation2 + $0xa8] sm:$0xff]  ;;  %v78_v14 = vld [vmem:[#allocation2 + $0xb0] sm:$0xff] }
  0x3e   :  { %v125_v8 = vld [vmem:[#allocation5 + $0xa8] sm:$0xff]  ;;  %405 = vst [vmem:[#allocation8 + $0x68] sm:$0xff] %v357_v60  ;;  %v359_v10 = vmul.f32 2.0, %v311_v61  ;;  %v313_v11 = vand.u32 2147483647, %v265_v62  ;;  %v267_v12 = vmul.f32 %v219_v59, %v171_v63  ;;  %v126_v15 = vld [vmem:[#allocation5 + $0xb0] sm:$0xff] }
  0x3f   :  { %v221_v9 = vld [vmem:[#allocation7 + $0xa8] sm:$0xff]  ;;  %v173_v13 = vsub.f32 %v77_v7, %v125_v8  ;;  %v222_v16 = vld [vmem:[#allocation7 + $0xb0] sm:$0xff]  ;;  %406 = vst [vmem:[#allocation8 + $0x70] sm:$0xff] %v358_v3  ;;  %v360_v17 = vmul.f32 2.0, %v312_v4  ;;  %v314_v18 = vand.u32 2147483647, %v266_v5  ;;  %v268_v19 = vmul.f32 %v220_v2, %v172_v6 }
  0x40   :  { %v174_v20 = vsub.f32 %v78_v14, %v126_v15  ;;  %v79_v21 = vld [vmem:[#allocation2 + $0xb8] sm:$0xff]  ;;  %407 = vst [vmem:[#allocation8 + $0x78] sm:$0xff] %v359_v10  ;;  %v361_v24 = vmul.f32 2.0, %v313_v11  ;;  %v315_v25 = vand.u32 2147483647, %v267_v12  ;;  %v80_v28 = vld [vmem:[#allocation2 + $0xc0] sm:$0xff] }
  0x41   :  { %v127_v22 = vld [vmem:[#allocation5 + $0xb8] sm:$0xff]  ;;  %v269_v26 = vmul.f32 %v221_v9, %v173_v13  ;;  %v128_v29 = vld [vmem:[#allocation5 + $0xc0] sm:$0xff]  ;;  %408 = vst [vmem:[#allocation8 + $0x80] sm:$0xff] %v360_v17  ;;  %v362_v31 = vmul.f32 2.0, %v314_v18  ;;  %v316_v32 = vand.u32 2147483647, %v268_v19 }
  0x42   :  { %v223_v23 = vld [vmem:[#allocation7 + $0xb8] sm:$0xff]  ;;  %v175_v27 = vsub.f32 %v79_v21, %v127_v22  ;;  %v224_v30 = vld [vmem:[#allocation7 + $0xc0] sm:$0xff]  ;;  %v270_v33 = vmul.f32 %v222_v16, %v174_v20  ;;  %v176_v34 = vsub.f32 %v80_v28, %v128_v29  ;;  %v81_v35 = vld [vmem:[#allocation2 + $0xc8] sm:$0xff]  ;;  %409 = vst [vmem:[#allocation8 + $0x88] sm:$0xff] %v361_v24  ;;  %v363_v38 = vmul.f32 2.0, %v315_v25 }
  0x43   :  { %v129_v36 = vld [vmem:[#allocation5 + $0xc8] sm:$0xff]  ;;  %v317_v39 = vand.u32 2147483647, %v269_v26  ;;  %v82_v42 = vld [vmem:[#allocation2 + $0xd0] sm:$0xff]  ;;  %410 = vst [vmem:[#allocation8 + $0x90] sm:$0xff] %v362_v31  ;;  %v364_v45 = vmul.f32 2.0, %v316_v32 }
  0x44   :  { %v225_v37 = vld [vmem:[#allocation7 + $0xc8] sm:$0xff]  ;;  %v271_v40 = vmul.f32 %v223_v23, %v175_v27  ;;  %v177_v41 = vsub.f32 %v81_v35, %v129_v36  ;;  %v130_v43 = vld [vmem:[#allocation5 + $0xd0] sm:$0xff]  ;;  %v318_v46 = vand.u32 2147483647, %v270_v33  ;;  %v272_v47 = vmul.f32 %v224_v30, %v176_v34  ;;  %v83_v49 = vld [vmem:[#allocation2 + $0xd8] sm:$0xff]  ;;  %411 = vst [vmem:[#allocation8 + $0x98] sm:$0xff] %v363_v38 }
  0x45   :  { %v226_v44 = vld [vmem:[#allocation7 + $0xd0] sm:$0xff]  ;;  %v178_v48 = vsub.f32 %v82_v42, %v130_v43  ;;  %v131_v50 = vld [vmem:[#allocation5 + $0xd8] sm:$0xff]  ;;  %v365_v52 = vmul.f32 2.0, %v317_v39  ;;  %v84_v56 = vld [vmem:[#allocation2 + $0xe0] sm:$0xff]  ;;  %412 = vst [vmem:[#allocation8 + $0xa0] sm:$0xff] %v364_v45 }
  0x46   :  { %v227_v51 = vld [vmem:[#allocation7 + $0xd8] sm:$0xff]  ;;  %v319_v53 = vand.u32 2147483647, %v271_v40  ;;  %v273_v54 = vmul.f32 %v225_v37, %v177_v41  ;;  %v179_v55 = vsub.f32 %v83_v49, %v131_v50  ;;  %v132_v57 = vld [vmem:[#allocation5 + $0xe0] sm:$0xff]  ;;  %v366_v59 = vmul.f32 2.0, %v318_v46  ;;  %v85_v63 = vld [vmem:[#allocation2 + $0xe8] sm:$0xff] }
  0x47   :  { %v228_v58 = vld [vmem:[#allocation7 + $0xe0] sm:$0xff]  ;;  %v320_v60 = vand.u32 2147483647, %v272_v47  ;;  %v274_v61 = vmul.f32 %v226_v44, %v178_v48  ;;  %v180_v62 = vsub.f32 %v84_v56, %v132_v57  ;;  %v133_v0 = vld [vmem:[#allocation5 + $0xe8] sm:$0xff]  ;;  %413 = vst [vmem:[#allocation8 + $0xa8] sm:$0xff] %v365_v52  ;;  %v86_v6 = vld [vmem:[#allocation2 + $0xf0] sm:$0xff] }
  0x48   :  { %v229_v1 = vld [vmem:[#allocation7 + $0xe8] sm:$0xff]  ;;  %v367_v2 = vmul.f32 2.0, %v319_v53  ;;  %v321_v3 = vand.u32 2147483647, %v273_v54  ;;  %v275_v4 = vmul.f32 %v227_v51, %v179_v55  ;;  %v181_v5 = vsub.f32 %v85_v63, %v133_v0  ;;  %v134_v7 = vld [vmem:[#allocation5 + $0xf0] sm:$0xff]  ;;  %414 = vst [vmem:[#allocation8 + $0xb0] sm:$0xff] %v366_v59 }
  0x49   :  { %v230_v8 = vld [vmem:[#allocation7 + $0xf0] sm:$0xff]  ;;  %v368_v9 = vmul.f32 2.0, %v320_v60  ;;  %v322_v10 = vand.u32 2147483647, %v274_v61  ;;  %v276_v11 = vmul.f32 %v228_v58, %v180_v62  ;;  %v182_v12 = vsub.f32 %v86_v6, %v134_v7  ;;  %v87_v13 = vld [vmem:[#allocation2 + $0xf8] sm:$0xff]  ;;  %v88_v20 = vld [vmem:[#allocation2 + $0x100] sm:$0xff] }
  0x4a   :  { %v135_v14 = vld [vmem:[#allocation5 + $0xf8] sm:$0xff]  ;;  %415 = vst [vmem:[#allocation8 + $0xb8] sm:$0xff] %v367_v2  ;;  %v369_v16 = vmul.f32 2.0, %v321_v3  ;;  %v323_v17 = vand.u32 2147483647, %v275_v4  ;;  %v277_v18 = vmul.f32 %v229_v1, %v181_v5  ;;  %v136_v21 = vld [vmem:[#allocation5 + $0x100] sm:$0xff] }
  0x4b   :  { %v231_v15 = vld [vmem:[#allocation7 + $0xf8] sm:$0xff]  ;;  %v183_v19 = vsub.f32 %v87_v13, %v135_v14  ;;  %v232_v22 = vld [vmem:[#allocation7 + $0x100] sm:$0xff]  ;;  %416 = vst [vmem:[#allocation8 + $0xc0] sm:$0xff] %v368_v9  ;;  %v370_v23 = vmul.f32 2.0, %v322_v10  ;;  %v324_v24 = vand.u32 2147483647, %v276_v11  ;;  %v278_v25 = vmul.f32 %v230_v8, %v182_v12 }
  0x4c   :  { %v184_v26 = vsub.f32 %v88_v20, %v136_v21  ;;  %v89_v27 = vld [vmem:[#allocation2 + $0x108] sm:$0xff]  ;;  %417 = vst [vmem:[#allocation8 + $0xc8] sm:$0xff] %v369_v16  ;;  %v371_v30 = vmul.f32 2.0, %v323_v17  ;;  %v325_v31 = vand.u32 2147483647, %v277_v18  ;;  %v90_v34 = vld [vmem:[#allocation2 + $0x110] sm:$0xff] }
  0x4d   :  { %v137_v28 = vld [vmem:[#allocation5 + $0x108] sm:$0xff]  ;;  %v279_v32 = vmul.f32 %v231_v15, %v183_v19  ;;  %v138_v35 = vld [vmem:[#allocation5 + $0x110] sm:$0xff]  ;;  %418 = vst [vmem:[#allocation8 + $0xd0] sm:$0xff] %v370_v23  ;;  %v372_v37 = vmul.f32 2.0, %v324_v24  ;;  %v326_v38 = vand.u32 2147483647, %v278_v25 }
  0x4e   :  { %v233_v29 = vld [vmem:[#allocation7 + $0x108] sm:$0xff]  ;;  %v185_v33 = vsub.f32 %v89_v27, %v137_v28  ;;  %v234_v36 = vld [vmem:[#allocation7 + $0x110] sm:$0xff]  ;;  %v280_v39 = vmul.f32 %v232_v22, %v184_v26  ;;  %v186_v40 = vsub.f32 %v90_v34, %v138_v35  ;;  %v91_v41 = vld [vmem:[#allocation2 + $0x118] sm:$0xff]  ;;  %419 = vst [vmem:[#allocation8 + $0xd8] sm:$0xff] %v371_v30  ;;  %v373_v44 = vmul.f32 2.0, %v325_v31 }
  0x4f   :  { %v139_v42 = vld [vmem:[#allocation5 + $0x118] sm:$0xff]  ;;  %v327_v45 = vand.u32 2147483647, %v279_v32  ;;  %v92_v48 = vld [vmem:[#allocation2 + $0x120] sm:$0xff]  ;;  %420 = vst [vmem:[#allocation8 + $0xe0] sm:$0xff] %v372_v37  ;;  %v374_v51 = vmul.f32 2.0, %v326_v38 }
  0x50   :  { %v235_v43 = vld [vmem:[#allocation7 + $0x118] sm:$0xff]  ;;  %v281_v46 = vmul.f32 %v233_v29, %v185_v33  ;;  %v187_v47 = vsub.f32 %v91_v41, %v139_v42  ;;  %v140_v49 = vld [vmem:[#allocation5 + $0x120] sm:$0xff]  ;;  %v328_v52 = vand.u32 2147483647, %v280_v39  ;;  %v282_v53 = vmul.f32 %v234_v36, %v186_v40  ;;  %v93_v55 = vld [vmem:[#allocation2 + $0x128] sm:$0xff]  ;;  %421 = vst [vmem:[#allocation8 + $0xe8] sm:$0xff] %v373_v44 }
  0x51   :  { %v236_v50 = vld [vmem:[#allocation7 + $0x120] sm:$0xff]  ;;  %v188_v54 = vsub.f32 %v92_v48, %v140_v49  ;;  %v141_v56 = vld [vmem:[#allocation5 + $0x128] sm:$0xff]  ;;  %v375_v58 = vmul.f32 2.0, %v327_v45  ;;  %v94_v62 = vld [vmem:[#allocation2 + $0x130] sm:$0xff]  ;;  %422 = vst [vmem:[#allocation8 + $0xf0] sm:$0xff] %v374_v51 }
  0x52   :  { %v237_v57 = vld [vmem:[#allocation7 + $0x128] sm:$0xff]  ;;  %v329_v59 = vand.u32 2147483647, %v281_v46  ;;  %v283_v60 = vmul.f32 %v235_v43, %v187_v47  ;;  %v189_v61 = vsub.f32 %v93_v55, %v141_v56  ;;  %v142_v63 = vld [vmem:[#allocation5 + $0x130] sm:$0xff]  ;;  %v376_v1 = vmul.f32 2.0, %v328_v52  ;;  %v95_v5 = vld [vmem:[#allocation2 + $0x138] sm:$0xff] }
  0x53   :  { %v238_v0 = vld [vmem:[#allocation7 + $0x130] sm:$0xff]  ;;  %v330_v2 = vand.u32 2147483647, %v282_v53  ;;  %v284_v3 = vmul.f32 %v236_v50, %v188_v54  ;;  %v190_v4 = vsub.f32 %v94_v62, %v142_v63  ;;  %v143_v6 = vld [vmem:[#allocation5 + $0x138] sm:$0xff]  ;;  %423 = vst [vmem:[#allocation8 + $0xf8] sm:$0xff] %v375_v58  ;;  %v96_v12 = vld [vmem:[#allocation2 + $0x140] sm:$0xff] }
  0x54   :  { %v239_v7 = vld [vmem:[#allocation7 + $0x138] sm:$0xff]  ;;  %v377_v8 = vmul.f32 2.0, %v329_v59  ;;  %v331_v9 = vand.u32 2147483647, %v283_v60  ;;  %v285_v10 = vmul.f32 %v237_v57, %v189_v61  ;;  %v191_v11 = vsub.f32 %v95_v5, %v143_v6  ;;  %v144_v13 = vld [vmem:[#allocation5 + $0x140] sm:$0xff]  ;;  %424 = vst [vmem:[#allocation8 + $0x100] sm:$0xff] %v376_v1 }
  0x55   :  { %v240_v14 = vld [vmem:[#allocation7 + $0x140] sm:$0xff]  ;;  %v378_v15 = vmul.f32 2.0, %v330_v2  ;;  %v332_v16 = vand.u32 2147483647, %v284_v3  ;;  %v286_v17 = vmul.f32 %v238_v0, %v190_v4  ;;  %v192_v18 = vsub.f32 %v96_v12, %v144_v13  ;;  %v97_v19 = vld [vmem:[#allocation2 + $0x148] sm:$0xff]  ;;  %v98_v26 = vld [vmem:[#allocation2 + $0x150] sm:$0xff] }
  0x56   :  { %v145_v20 = vld [vmem:[#allocation5 + $0x148] sm:$0xff]  ;;  %425 = vst [vmem:[#allocation8 + $0x108] sm:$0xff] %v377_v8  ;;  %v379_v22 = vmul.f32 2.0, %v331_v9  ;;  %v333_v23 = vand.u32 2147483647, %v285_v10  ;;  %v287_v24 = vmul.f32 %v239_v7, %v191_v11  ;;  %v146_v27 = vld [vmem:[#allocation5 + $0x150] sm:$0xff] }
  0x57   :  { %v241_v21 = vld [vmem:[#allocation7 + $0x148] sm:$0xff]  ;;  %v193_v25 = vsub.f32 %v97_v19, %v145_v20  ;;  %v242_v28 = vld [vmem:[#allocation7 + $0x150] sm:$0xff]  ;;  %426 = vst [vmem:[#allocation8 + $0x110] sm:$0xff] %v378_v15  ;;  %v380_v29 = vmul.f32 2.0, %v332_v16  ;;  %v334_v30 = vand.u32 2147483647, %v286_v17  ;;  %v288_v31 = vmul.f32 %v240_v14, %v192_v18 }
  0x58   :  { %v194_v32 = vsub.f32 %v98_v26, %v146_v27  ;;  %v99_v33 = vld [vmem:[#allocation2 + $0x158] sm:$0xff]  ;;  %427 = vst [vmem:[#allocation8 + $0x118] sm:$0xff] %v379_v22  ;;  %v381_v36 = vmul.f32 2.0, %v333_v23  ;;  %v335_v37 = vand.u32 2147483647, %v287_v24  ;;  %v100_v40 = vld [vmem:[#allocation2 + $0x160] sm:$0xff] }
  0x59   :  { %v147_v34 = vld [vmem:[#allocation5 + $0x158] sm:$0xff]  ;;  %v289_v38 = vmul.f32 %v241_v21, %v193_v25  ;;  %v148_v41 = vld [vmem:[#allocation5 + $0x160] sm:$0xff]  ;;  %428 = vst [vmem:[#allocation8 + $0x120] sm:$0xff] %v380_v29  ;;  %v382_v43 = vmul.f32 2.0, %v334_v30  ;;  %v336_v44 = vand.u32 2147483647, %v288_v31 }
  0x5a   :  { %v243_v35 = vld [vmem:[#allocation7 + $0x158] sm:$0xff]  ;;  %v195_v39 = vsub.f32 %v99_v33, %v147_v34  ;;  %v244_v42 = vld [vmem:[#allocation7 + $0x160] sm:$0xff]  ;;  %v290_v45 = vmul.f32 %v242_v28, %v194_v32  ;;  %v196_v46 = vsub.f32 %v100_v40, %v148_v41  ;;  %v101_v47 = vld [vmem:[#allocation2 + $0x168] sm:$0xff]  ;;  %429 = vst [vmem:[#allocation8 + $0x128] sm:$0xff] %v381_v36  ;;  %v383_v50 = vmul.f32 2.0, %v335_v37 }
  0x5b   :  { %v149_v48 = vld [vmem:[#allocation5 + $0x168] sm:$0xff]  ;;  %v337_v51 = vand.u32 2147483647, %v289_v38  ;;  %v102_v54 = vld [vmem:[#allocation2 + $0x170] sm:$0xff]  ;;  %430 = vst [vmem:[#allocation8 + $0x130] sm:$0xff] %v382_v43  ;;  %v384_v57 = vmul.f32 2.0, %v336_v44 }
  0x5c   :  { %v245_v49 = vld [vmem:[#allocation7 + $0x168] sm:$0xff]  ;;  %v291_v52 = vmul.f32 %v243_v35, %v195_v39  ;;  %v197_v53 = vsub.f32 %v101_v47, %v149_v48  ;;  %v150_v55 = vld [vmem:[#allocation5 + $0x170] sm:$0xff]  ;;  %v338_v58 = vand.u32 2147483647, %v290_v45  ;;  %v292_v59 = vmul.f32 %v244_v42, %v196_v46  ;;  %v103_v61 = vld [vmem:[#allocation2 + $0x178] sm:$0xff]  ;;  %431 = vst [vmem:[#allocation8 + $0x138] sm:$0xff] %v383_v50 }
  0x5d   :  { %v246_v56 = vld [vmem:[#allocation7 + $0x170] sm:$0xff]  ;;  %v198_v60 = vsub.f32 %v102_v54, %v150_v55  ;;  %v151_v62 = vld [vmem:[#allocation5 + $0x178] sm:$0xff]  ;;  %v385_v0 = vmul.f32 2.0, %v337_v51  ;;  %432 = vst [vmem:[#allocation8 + $0x140] sm:$0xff] %v384_v57 }
  0x5e   :  { %v247_v63 = vld [vmem:[#allocation7 + $0x178] sm:$0xff]  ;;  %v339_v1 = vand.u32 2147483647, %v291_v52  ;;  %v293_v2 = vmul.f32 %v245_v49, %v197_v53  ;;  %v199_v3 = vsub.f32 %v103_v61, %v151_v62  ;;  %v386_v4 = vmul.f32 2.0, %v338_v58 }
  0x5f   :  { %v340_v5 = vand.u32 2147483647, %v292_v59  ;;  %v294_v6 = vmul.f32 %v246_v56, %v198_v60  ;;  %433 = vst [vmem:[#allocation8 + $0x148] sm:$0xff] %v385_v0 }
  0x60   :  { %v387_v7 = vmul.f32 2.0, %v339_v1  ;;  %v341_v8 = vand.u32 2147483647, %v293_v2  ;;  %v295_v9 = vmul.f32 %v247_v63, %v199_v3  ;;  %434 = vst [vmem:[#allocation8 + $0x150] sm:$0xff] %v386_v4 }
  0x61   :  { %v388_v10 = vmul.f32 2.0, %v340_v5  ;;  %v342_v11 = vand.u32 2147483647, %v294_v6 }
  0x62   :  { %435 = vst [vmem:[#allocation8 + $0x158] sm:$0xff] %v387_v7  ;;  %v389_v12 = vmul.f32 2.0, %v341_v8  ;;  %v343_v13 = vand.u32 2147483647, %v295_v9 }
  0x63   :  { %436 = vst [vmem:[#allocation8 + $0x160] sm:$0xff] %v388_v10  ;;  %v390_v14 = vmul.f32 2.0, %v342_v11 }
  0x64   :  { %437 = vst [vmem:[#allocation8 + $0x168] sm:$0xff] %v389_v12  ;;  %v391_v15 = vmul.f32 2.0, %v343_v13 }
  0x65   :  { %438 = vst [vmem:[#allocation8 + $0x170] sm:$0xff] %v390_v14 }
  0x66   :  { %439 = vst [vmem:[#allocation8 + $0x178] sm:$0xff] %v391_v15 }
  0x67   :  { %535 = shalt.err (!%p532_p5)
}
  0x68   :  { %451 = dma.vmem_to_hbm [thread:$0]  %s446_s2, 6144, %s603_s3, [#allocation4], %s552_s17, %s552_s17, %s553_s18  }
  0x69   :  { %548 = dma.done.wait [#allocation4], 6144  }
  0x6a   :  { %549 = vsyncadd [#allocation4], 4294961152 }
  0x6b   :  { %455 = vsyncpa [#allocation3], 1 }
  0x6c   :  { %456 = vsyncpa [#allocation6], 1 }
  0x6d   :  { %457 = vsyncpa [#allocation4], 1 }

</bundles_post_ra>
